<compile_context>
chip_gen: v5e
topology: v5e:2x2
jax: 0.10.0
libtpu: 0.0.40
codegen_flags: <defaults>
</compile_context>

<pallas_src>
import functools

import jax
import jax.numpy as jnp
from jax.experimental import pallas as pl
from jax.experimental.pallas import tpu as pltpu


# -----------------------------------------------------------------------------
# Pass 1: scatter-mean over node tiles + gated MLP on the [B, H] means.
# -----------------------------------------------------------------------------
def _reduce_mlp_kernel(bid_ref, hv_ref, w1t_ref, b1_ref, w2t_ref, b2_ref,
                       gate_ref, acc_ref, cnt_ref, *, num_batches):
    # bid_ref : [1, tile_n] int32 (padded rows carry an out-of-range id)
    # hv_ref  : [tile_n, H] f32
    # w1t_ref : [H, H] (W1.T, bf16)    b1_ref : [1, H] f32
    # w2t_ref : [H, H] (W2.T, bf16)    b2_ref : [1, H] f32
    # gate_ref: [B, H] f32 output (resident across the reduction grid)
    # acc_ref : [B, H] f32 scratch     cnt_ref: [B, 1] f32 scratch
    i = pl.program_id(0)

    @pl.when(i == 0)
    def _():
        acc_ref[...] = jnp.zeros_like(acc_ref)
        cnt_ref[...] = jnp.zeros_like(cnt_ref)

    bid = bid_ref[...]                                               # [1, tn]
    tn = hv_ref.shape[0]
    biota = jax.lax.broadcasted_iota(jnp.int32, (num_batches, tn), 0)
    onehot = (biota == bid).astype(jnp.float32)                      # [B, tn]

    # Per-tile scatter-sum on the MXU (out-of-range padded ids contribute 0).
    acc_ref[...] += jnp.dot(onehot, hv_ref[...].astype(jnp.float32),
                            preferred_element_type=jnp.float32)      # [B, H]
    cnt_ref[...] += jnp.sum(onehot, axis=1, keepdims=True)           # [B, 1]

    @pl.when(i == pl.num_programs(0) - 1)
    def _():
        # scatter_mean semantics: empty graphs stay 0 (counts clamped to 1).
        inv = pl.reciprocal(jnp.maximum(cnt_ref[...], 1.0), approx=True)
        c_v = acc_ref[...] * inv                                     # [B, H] f32
        hid = jnp.dot(c_v.astype(w1t_ref.dtype), w1t_ref[...],
                      preferred_element_type=jnp.float32) + b1_ref[...]
        hid = jnp.maximum(hid, 0.0)
        logits = jnp.dot(hid.astype(w2t_ref.dtype), w2t_ref[...],
                         preferred_element_type=jnp.float32) + b2_ref[...]
        gate_ref[...] = jax.nn.sigmoid(logits)


# -----------------------------------------------------------------------------
# Pass 2: out = h_V * gate[batch_id]   (parallel over node tiles)
# -----------------------------------------------------------------------------
def _apply_gate_kernel(bid_ref, hv_ref, gate_ref, out_ref, *, num_batches):
    # bid_ref : [tile_n, 1] int32   hv_ref/out_ref: [tile_n, H]   gate_ref: [B, H]
    tn = hv_ref.shape[0]
    biota = jax.lax.broadcasted_iota(jnp.int32, (tn, num_batches), 1)
    onehot_t = (biota == bid_ref[...]).astype(jnp.float32)           # [tn, B]
    # Row-gather gate[batch_id] as a tiny K=B one-hot matmul (no [N,H]x[H,H] work).
    g = jnp.dot(onehot_t, gate_ref[...], preferred_element_type=jnp.float32)
    out_ref[...] = (hv_ref[...].astype(jnp.float32) * g).astype(out_ref.dtype)


# -----------------------------------------------------------------------------
# Wrappers
# -----------------------------------------------------------------------------
def prepare_context_params(params, matmul_dtype=jnp.bfloat16):
    """One-time prep (at init): pre-transpose Linear weights to [in, out] and
    cast to the MXU dtype so no transpose/cast is emitted per forward call."""
    H = params["w1"].shape[0]
    return {
        "w1t": jnp.asarray(params["w1"]).T.astype(matmul_dtype),
        "b1": jnp.asarray(params["b1"]).reshape(1, H).astype(jnp.float32),
        "w2t": jnp.asarray(params["w2"]).T.astype(matmul_dtype),
        "b2": jnp.asarray(params["b2"]).reshape(1, H).astype(jnp.float32),
    }


def _round_up(x, m):
    return (x + m - 1) // m * m


@functools.partial(jax.jit, static_argnames=("num_batches", "tile_n"))
def context_forward(h_V, batch_id, prepared, num_batches, *, tile_n=256):
    """h_V: [N, H] f32, batch_id: [N] int with values in [0, num_batches)."""
    N, H = h_V.shape
    B = num_batches
    batch_id = batch_id.astype(jnp.int32)

    # Tile the node dimension; pad so every tile is full.  Padded rows get an
    # out-of-range batch id -> zero one-hot -> no contribution, zero output.
    if N <= tile_n:
        n_pad = max(_round_up(N, 8), 8)
        tile_n = n_pad
    else:
        n_pad = _round_up(N, tile_n)
    if n_pad != N:
        h_V_p = jnp.pad(h_V, ((0, n_pad - N), (0, 0)))
        batch_id = jnp.pad(batch_id, (0, n_pad - N), constant_values=num_batches)
    else:
        h_V_p = h_V
    nt = n_pad // tile_n

    bid_row = batch_id.reshape(1, n_pad)   # lanes    -> pass 1 [B, tn] one-hot
    bid_col = batch_id.reshape(n_pad, 1)   # sublanes -> pass 2 [tn, B] one-hot
    wbytes = prepared["w1t"].dtype.itemsize

    # ---- Pass 1: [B, H] sigmoid gate --------------------------------------
    gate = pl.pallas_call(
        functools.partial(_reduce_mlp_kernel, num_batches=B),
        out_shape=jax.ShapeDtypeStruct((B, H), jnp.float32),
        grid_spec=pltpu.PrefetchScalarGridSpec(
            num_scalar_prefetch=0,
            grid=(nt,),
            in_specs=[
                pl.BlockSpec((1, tile_n), lambda i: (0, i)),
                pl.BlockSpec((tile_n, H), lambda i: (i, 0)),
                pl.BlockSpec((H, H), lambda i: (0, 0)),
                pl.BlockSpec((1, H), lambda i: (0, 0)),
                pl.BlockSpec((H, H), lambda i: (0, 0)),
                pl.BlockSpec((1, H), lambda i: (0, 0)),
            ],
            out_specs=pl.BlockSpec((B, H), lambda i: (0, 0)),
            scratch_shapes=[pltpu.VMEM((B, H), jnp.float32),
                            pltpu.VMEM((B, 1), jnp.float32)],
        ),
        compiler_params=pltpu.CompilerParams(
            dimension_semantics=("arbitrary",),
            vmem_limit_bytes=32 * 1024 * 1024),
        cost_estimate=pl.CostEstimate(
            flops=2 * n_pad * B * H + 4 * B * H * H,
            transcendentals=B * H + B,
            bytes_accessed=n_pad * H * 4 + n_pad * 4 + 2 * H * H * wbytes
                           + 2 * H * 4 + B * H * 4),
    )(bid_row, h_V_p, prepared["w1t"], prepared["b1"],
      prepared["w2t"], prepared["b2"])

    # ---- Pass 2: elementwise multiply (HBM-bandwidth bound, pipelined) ----
    out = pl.pallas_call(
        functools.partial(_apply_gate_kernel, num_batches=B),
        out_shape=jax.ShapeDtypeStruct((n_pad, H), h_V.dtype),
        grid_spec=pltpu.PrefetchScalarGridSpec(
            num_scalar_prefetch=0,
            grid=(nt,),
            in_specs=[
                pl.BlockSpec((tile_n, 1), lambda i: (i, 0)),
                pl.BlockSpec((tile_n, H), lambda i: (i, 0)),
                pl.BlockSpec((B, H), lambda i: (0, 0)),
            ],
            out_specs=pl.BlockSpec((tile_n, H), lambda i: (i, 0)),
        ),
        compiler_params=pltpu.CompilerParams(
            dimension_semantics=("parallel",),
            vmem_limit_bytes=32 * 1024 * 1024),
        cost_estimate=pl.CostEstimate(
            flops=2 * n_pad * B * H + n_pad * H,
            transcendentals=0,
            bytes_accessed=2 * n_pad * H * 4 + n_pad * 4 + B * H * 4),
    )(bid_col, h_V_p, gate)

    return out[:N] if n_pad != N else out


def context_reference(h_V, batch_id, params, num_batches):
    """Pure-JAX f32 reference mirroring the PyTorch forward."""
    onehot = jax.nn.one_hot(batch_id, num_batches, dtype=jnp.float32)   # [N, B]
    counts = jnp.maximum(onehot.sum(axis=0), 1.0)                       # [B]
    c_V = (onehot.T @ h_V) / counts[:, None]                            # [B, H]
    gathered = c_V[batch_id]                                            # [N, H]
    hid = jnp.maximum(gathered @ params["w1"].T + params["b1"], 0.0)
    gate = jax.nn.sigmoid(hid @ params["w2"].T + params["b2"])
    return h_V * gate


if __name__ == "__main__":
    H = 32          # num_hidden
    key = jax.random.PRNGKey(0)
    k_h, k_w1, k_b1, k_w2, k_b2, k_h2, k_b = jax.random.split(key, 7)

    # PyTorch Linear layout: weight [out, in], bias [out].
    params = {
        "w1": jax.random.normal(k_w1, (H, H), dtype=jnp.float32) * 0.1,
        "b1": jax.random.normal(k_b1, (H,), dtype=jnp.float32) * 0.1,
        "w2": jax.random.normal(k_w2, (H, H), dtype=jnp.float32) * 0.1,
        "b2": jax.random.normal(k_b2, (H,), dtype=jnp.float32) * 0.1,
    }
    prepared = prepare_context_params(params)          # one-time (init-time) prep

    # Case 1: small graph batch (single tile).
    N1, B1 = 8, 2
    h_V1 = jax.random.normal(k_h, (N1, H), dtype=jnp.float32)
    bid1 = jnp.array([0, 0, 0, 1, 1, 1, 1, 0], dtype=jnp.int32)
    out1 = jax.block_until_ready(context_forward(h_V1, bid1, prepared, B1))
    ref1 = context_reference(h_V1, bid1, params, B1)
    assert out1.shape == (N1, H)
    assert jnp.allclose(out1, ref1, atol=2e-2, rtol=2e-2), "mismatch (case 1)"

    # Case 2: multi-tile path (grid > 1, padding, 3 graphs).
    N2, B2 = 300, 3
    h_V2 = jax.random.normal(k_h2, (N2, H), dtype=jnp.float32)
    bid2 = jax.random.randint(k_b, (N2,), 0, B2, dtype=jnp.int32)
    out2 = jax.block_until_ready(context_forward(h_V2, bid2, prepared, B2))
    ref2 = context_reference(h_V2, bid2, params, B2)
    assert out2.shape == (N2, H)
    assert jnp.allclose(out2, ref2, atol=2e-2, rtol=2e-2), "mismatch (case 2)"

    print("KERNEL_OK")
</pallas_src>

<mosaic_0001>
module attributes {stable_mosaic.version = 11 : i64} {
  func.func @_reduce_mlp_kernel(%arg0: i32, %arg1: memref<1x8xi32, #tpu.memory_space<vmem>>, %arg2: memref<8x32xf32, #tpu.memory_space<vmem>>, %arg3: memref<32x32xbf16, #tpu.memory_space<vmem>>, %arg4: memref<1x32xf32, #tpu.memory_space<vmem>>, %arg5: memref<32x32xbf16, #tpu.memory_space<vmem>>, %arg6: memref<1x32xf32, #tpu.memory_space<vmem>>, %arg7: memref<2x32xf32, #tpu.memory_space<vmem>>, %arg8: memref<2x32xf32, #tpu.memory_space<vmem>>, %arg9: memref<2x1xf32, #tpu.memory_space<vmem>>) attributes {dimension_semantics = [#tpu.dimension_semantics<arbitrary>], iteration_bounds = array<i64: 1>, scalar_prefetch = 0 : i64, scratch_operands = 2 : i64, tpu.core_type = #tpu.core_type<tc>, window_params = [{transform_indices = @transform_0, window_bounds = array<i64: 1, 8>}, {transform_indices = @transform_1, window_bounds = array<i64: 8, 32>}, {pipeline_mode = #tpu.pipeline_mode<synchronous>, transform_indices = @transform_2, window_bounds = array<i64: 32, 32>}, {pipeline_mode = #tpu.pipeline_mode<synchronous>, transform_indices = @transform_3, window_bounds = array<i64: 1, 32>}, {pipeline_mode = #tpu.pipeline_mode<synchronous>, transform_indices = @transform_4, window_bounds = array<i64: 32, 32>}, {pipeline_mode = #tpu.pipeline_mode<synchronous>, transform_indices = @transform_5, window_bounds = array<i64: 1, 32>}, {pipeline_mode = #tpu.pipeline_mode<synchronous>, transform_indices = @transform_6, window_bounds = array<i64: 2, 32>}]} {
    %c0_i32 = arith.constant 0 : i32
    %0 = arith.cmpi eq, %arg0, %c0_i32 : i32
    %1 = arith.extui %0 : i1 to i32
    %c0_i32_0 = arith.constant 0 : i32
    %2 = arith.cmpi ne, %1, %c0_i32_0 : i32
    scf.if %2 {
      %cst_15 = arith.constant 0.000000e+00 : f32
      %22 = vector.broadcast %cst_15 : f32 to vector<2x32xf32>
      %c0_16 = arith.constant 0 : index
      %c0_17 = arith.constant 0 : index
      %23 = vector.load %arg8[%c0_16, %c0_17] : memref<2x32xf32, #tpu.memory_space<vmem>>, vector<2x32xf32>
      tpu.vector_store %arg8[%c0_16, %c0_17], %22 {strides = array<i32>} : memref<2x32xf32, #tpu.memory_space<vmem>>, vector<2x32xf32>,
      %cst_18 = arith.constant 0.000000e+00 : f32
      %24 = vector.broadcast %cst_18 : f32 to vector<2x1xf32>
      %c0_19 = arith.constant 0 : index
      %c0_20 = arith.constant 0 : index
      %25 = vector.load %arg9[%c0_19, %c0_20] : memref<2x1xf32, #tpu.memory_space<vmem>>, vector<2x1xf32>
      tpu.vector_store %arg9[%c0_19, %c0_20], %24 {strides = array<i32>} : memref<2x1xf32, #tpu.memory_space<vmem>>, vector<2x1xf32>,
    } else {
    }
    %c0 = arith.constant 0 : index
    %c0_1 = arith.constant 0 : index
    %3 = vector.load %arg1[%c0, %c0_1] : memref<1x8xi32, #tpu.memory_space<vmem>>, vector<1x8xi32>
    %4 = tpu.iota {dimensions = array<i32: 0>} : vector<2x8xi32>
    %5 = vector.broadcast %3 : vector<1x8xi32> to vector<2x8xi32>
    %6 = arith.cmpi eq, %4, %5 : vector<2x8xi32>
    %7 = arith.extui %6 : vector<2x8xi1> to vector<2x8xi32>
    %8 = arith.sitofp %7 : vector<2x8xi32> to vector<2x8xf32>
    %c0_2 = arith.constant 0 : index
    %c0_3 = arith.constant 0 : index
    %9 = vector.load %arg8[%c0_2, %c0_3] : memref<2x32xf32, #tpu.memory_space<vmem>>, vector<2x32xf32>
    %c0_4 = arith.constant 0 : index
    %c0_5 = arith.constant 0 : index
    %10 = vector.load %arg2[%c0_4, %c0_5] : memref<8x32xf32, #tpu.memory_space<vmem>>, vector<8x32xf32>
    %cst = arith.constant dense<0.000000e+00> : vector<2x32xf32>
    %11 = tpu.matmul %8, %10, %cst {dimension_numbers = #tpu.dot_dimension_numbers<[1], [0], [0], [1], [0, 0, 1, 1], [], []>} : vector<2x8xf32>, vector<8x32xf32>, vector<2x32xf32> -> vector<2x32xf32>
    %12 = arith.addf %9, %11 : vector<2x32xf32>
    %c0_6 = arith.constant 0 : index
    %c0_7 = arith.constant 0 : index
    %13 = vector.load %arg8[%c0_6, %c0_7] : memref<2x32xf32, #tpu.memory_space<vmem>>, vector<2x32xf32>
    tpu.vector_store %arg8[%c0_6, %c0_7], %12 {strides = array<i32>} : memref<2x32xf32, #tpu.memory_space<vmem>>, vector<2x32xf32>,
    %c0_8 = arith.constant 0 : index
    %c0_9 = arith.constant 0 : index
    %14 = vector.load %arg9[%c0_8, %c0_9] : memref<2x1xf32, #tpu.memory_space<vmem>>, vector<2x1xf32>
    %cst_10 = arith.constant dense<0.000000e+00> : vector<2xf32>
    %15 = vector.multi_reduction <add>, %8, %cst_10 [1] : vector<2x8xf32> to vector<2xf32>
    %16 = vector.shape_cast %15 : vector<2xf32> to vector<2x1xf32>
    %17 = arith.addf %14, %16 : vector<2x1xf32>
    %c0_11 = arith.constant 0 : index
    %c0_12 = arith.constant 0 : index
    %18 = vector.load %arg9[%c0_11, %c0_12] : memref<2x1xf32, #tpu.memory_space<vmem>>, vector<2x1xf32>
    tpu.vector_store %arg9[%c0_11, %c0_12], %17 {strides = array<i32>} : memref<2x1xf32, #tpu.memory_space<vmem>>, vector<2x1xf32>,
    %c0_i32_13 = arith.constant 0 : i32
    %19 = arith.cmpi eq, %arg0, %c0_i32_13 : i32
    %20 = arith.extui %19 : i1 to i32
    %c0_i32_14 = arith.constant 0 : i32
    %21 = arith.cmpi ne, %20, %c0_i32_14 : i32
    scf.if %21 {
      %c0_15 = arith.constant 0 : index
      %c0_16 = arith.constant 0 : index
      %22 = vector.load %arg9[%c0_15, %c0_16] : memref<2x1xf32, #tpu.memory_space<vmem>>, vector<2x1xf32>
      %cst_17 = arith.constant 1.000000e+00 : f32
      %23 = vector.broadcast %cst_17 : f32 to vector<2x1xf32>
      %24 = arith.maximumf %22, %23 : vector<2x1xf32>
      %25 = tpu.reciprocal %24 {approx = true} : vector<2x1xf32> -> vector<2x1xf32>
      %c0_18 = arith.constant 0 : index
      %c0_19 = arith.constant 0 : index
      %26 = vector.load %arg8[%c0_18, %c0_19] : memref<2x32xf32, #tpu.memory_space<vmem>>, vector<2x32xf32>
      %27 = vector.broadcast %25 : vector<2x1xf32> to vector<2x32xf32>
      %28 = arith.mulf %26, %27 : vector<2x32xf32>
      %29 = arith.truncf %28 : vector<2x32xf32> to vector<2x32xbf16>
      %c0_20 = arith.constant 0 : index
      %c0_21 = arith.constant 0 : index
      %30 = vector.load %arg3[%c0_20, %c0_21] : memref<32x32xbf16, #tpu.memory_space<vmem>>, vector<32x32xbf16>
      %cst_22 = arith.constant dense<0.000000e+00> : vector<2x32xf32>
      %31 = tpu.matmul %29, %30, %cst_22 {dimension_numbers = #tpu.dot_dimension_numbers<[1], [0], [0], [1], [0, 0, 1, 1], [], []>} : vector<2x32xbf16>, vector<32x32xbf16>, vector<2x32xf32> -> vector<2x32xf32>
      %c0_23 = arith.constant 0 : index
      %c0_24 = arith.constant 0 : index
      %32 = vector.load %arg4[%c0_23, %c0_24] : memref<1x32xf32, #tpu.memory_space<vmem>>, vector<1x32xf32>
      %33 = vector.broadcast %32 : vector<1x32xf32> to vector<2x32xf32>
      %34 = arith.addf %31, %33 : vector<2x32xf32>
      %cst_25 = arith.constant 0.000000e+00 : f32
      %35 = vector.broadcast %cst_25 : f32 to vector<2x32xf32>
      %36 = arith.maximumf %34, %35 : vector<2x32xf32>
      %37 = arith.truncf %36 : vector<2x32xf32> to vector<2x32xbf16>
      %c0_26 = arith.constant 0 : index
      %c0_27 = arith.constant 0 : index
      %38 = vector.load %arg5[%c0_26, %c0_27] : memref<32x32xbf16, #tpu.memory_space<vmem>>, vector<32x32xbf16>
      %cst_28 = arith.constant dense<0.000000e+00> : vector<2x32xf32>
      %39 = tpu.matmul %37, %38, %cst_28 {dimension_numbers = #tpu.dot_dimension_numbers<[1], [0], [0], [1], [0, 0, 1, 1], [], []>} : vector<2x32xbf16>, vector<32x32xbf16>, vector<2x32xf32> -> vector<2x32xf32>
      %c0_29 = arith.constant 0 : index
      %c0_30 = arith.constant 0 : index
      %40 = vector.load %arg6[%c0_29, %c0_30] : memref<1x32xf32, #tpu.memory_space<vmem>>, vector<1x32xf32>
      %41 = vector.broadcast %40 : vector<1x32xf32> to vector<2x32xf32>
      %42 = arith.addf %39, %41 : vector<2x32xf32>
      %43 = arith.negf %42 : vector<2x32xf32>
      %44 = math.exp %43 : vector<2x32xf32>
      %cst_31 = arith.constant 1.000000e+00 : f32
      %45 = vector.broadcast %cst_31 : f32 to vector<2x32xf32>
      %46 = arith.addf %45, %44 : vector<2x32xf32>
      %47 = arith.divf %45, %46 : vector<2x32xf32>
      %c0_32 = arith.constant 0 : index
      %c0_33 = arith.constant 0 : index
      %48 = vector.load %arg7[%c0_32, %c0_33] : memref<2x32xf32, #tpu.memory_space<vmem>>, vector<2x32xf32>
      tpu.vector_store %arg7[%c0_32, %c0_33], %47 {strides = array<i32>} : memref<2x32xf32, #tpu.memory_space<vmem>>, vector<2x32xf32>,
    } else {
    }
    return
  }
  func.func @transform_0(%arg0: i32) -> (i32, i32) {
    %c0_i32 = arith.constant 0 : i32
    %c0_i32_0 = arith.constant 0 : i32
    return %c0_i32, %arg0 : i32, i32
  }
  func.func @transform_1(%arg0: i32) -> (i32, i32) {
    %c0_i32 = arith.constant 0 : i32
    %c0_i32_0 = arith.constant 0 : i32
    return %arg0, %c0_i32 : i32, i32
  }
  func.func @transform_2(%arg0: i32) -> (i32, i32) {
    %c0_i32 = arith.constant 0 : i32
    %c0_i32_0 = arith.constant 0 : i32
    %c0_i32_1 = arith.constant 0 : i32
    return %c0_i32, %c0_i32_0 : i32, i32
  }
  func.func @transform_3(%arg0: i32) -> (i32, i32) {
    %c0_i32 = arith.constant 0 : i32
    %c0_i32_0 = arith.constant 0 : i32
    %c0_i32_1 = arith.constant 0 : i32
    return %c0_i32, %c0_i32_0 : i32, i32
  }
  func.func @transform_4(%arg0: i32) -> (i32, i32) {
    %c0_i32 = arith.constant 0 : i32
    %c0_i32_0 = arith.constant 0 : i32
    %c0_i32_1 = arith.constant 0 : i32
    return %c0_i32, %c0_i32_0 : i32, i32
  }
  func.func @transform_5(%arg0: i32) -> (i32, i32) {
    %c0_i32 = arith.constant 0 : i32
    %c0_i32_0 = arith.constant 0 : i32
    %c0_i32_1 = arith.constant 0 : i32
    return %c0_i32, %c0_i32_0 : i32, i32
  }
  func.func @transform_6(%arg0: i32) -> (i32, i32) {
    %c0_i32 = arith.constant 0 : i32
    %c0_i32_0 = arith.constant 0 : i32
    %c0_i32_1 = arith.constant 0 : i32
    return %c0_i32, %c0_i32_0 : i32, i32
  }
}

module attributes {stable_mosaic.version = 11 : i64} {
  func.func @_apply_gate_kernel(%arg0: i32, %arg1: memref<8x1xi32, #tpu.memory_space<vmem>>, %arg2: memref<8x32xf32, #tpu.memory_space<vmem>>, %arg3: memref<2x32xf32, #tpu.memory_space<vmem>>, %arg4: memref<8x32xf32, #tpu.memory_space<vmem>>) attributes {dimension_semantics = [#tpu.dimension_semantics<parallel>], iteration_bounds = array<i64: 1>, scalar_prefetch = 0 : i64, scratch_operands = 0 : i64, tpu.core_type = #tpu.core_type<tc>, window_params = [{transform_indices = @transform_0, window_bounds = array<i64: 8, 1>}, {transform_indices = @transform_1, window_bounds = array<i64: 8, 32>}, {pipeline_mode = #tpu.pipeline_mode<synchronous>, transform_indices = @transform_2, window_bounds = array<i64: 2, 32>}, {transform_indices = @transform_3, window_bounds = array<i64: 8, 32>}]} {
    %0 = tpu.iota {dimensions = array<i32: 1>} : vector<8x2xi32>
    %c0 = arith.constant 0 : index
    %c0_0 = arith.constant 0 : index
    %1 = vector.load %arg1[%c0, %c0_0] : memref<8x1xi32, #tpu.memory_space<vmem>>, vector<8x1xi32>
    %2 = vector.broadcast %1 : vector<8x1xi32> to vector<8x2xi32>
    %3 = arith.cmpi eq, %0, %2 : vector<8x2xi32>
    %4 = arith.extui %3 : vector<8x2xi1> to vector<8x2xi32>
    %5 = arith.sitofp %4 : vector<8x2xi32> to vector<8x2xf32>
    %c0_1 = arith.constant 0 : index
    %c0_2 = arith.constant 0 : index
    %6 = vector.load %arg3[%c0_1, %c0_2] : memref<2x32xf32, #tpu.memory_space<vmem>>, vector<2x32xf32>
    %cst = arith.constant dense<0.000000e+00> : vector<8x32xf32>
    %7 = tpu.matmul %5, %6, %cst {dimension_numbers = #tpu.dot_dimension_numbers<[1], [0], [0], [1], [0, 0, 1, 1], [], []>} : vector<8x2xf32>, vector<2x32xf32>, vector<8x32xf32> -> vector<8x32xf32>
    %c0_3 = arith.constant 0 : index
    %c0_4 = arith.constant 0 : index
    %8 = vector.load %arg2[%c0_3, %c0_4] : memref<8x32xf32, #tpu.memory_space<vmem>>, vector<8x32xf32>
    %9 = arith.mulf %8, %7 : vector<8x32xf32>
    %c0_5 = arith.constant 0 : index
    %c0_6 = arith.constant 0 : index
    %10 = vector.load %arg4[%c0_5, %c0_6] : memref<8x32xf32, #tpu.memory_space<vmem>>, vector<8x32xf32>
    tpu.vector_store %arg4[%c0_5, %c0_6], %9 {strides = array<i32>} : memref<8x32xf32, #tpu.memory_space<vmem>>, vector<8x32xf32>,
    return
  }
  func.func @transform_0(%arg0: i32) -> (i32, i32) {
    %c0_i32 = arith.constant 0 : i32
    %c0_i32_0 = arith.constant 0 : i32
    return %arg0, %c0_i32 : i32, i32
  }
  func.func @transform_1(%arg0: i32) -> (i32, i32) {
    %c0_i32 = arith.constant 0 : i32
    %c0_i32_0 = arith.constant 0 : i32
    return %arg0, %c0_i32 : i32, i32
  }
  func.func @transform_2(%arg0: i32) -> (i32, i32) {
    %c0_i32 = arith.constant 0 : i32
    %c0_i32_0 = arith.constant 0 : i32
    %c0_i32_1 = arith.constant 0 : i32
    return %c0_i32, %c0_i32_0 : i32, i32
  }
  func.func @transform_3(%arg0: i32) -> (i32, i32) {
    %c0_i32 = arith.constant 0 : i32
    %c0_i32_0 = arith.constant 0 : i32
    return %arg0, %c0_i32 : i32, i32
  }
}

</mosaic_0001>

<bundles_post_ra>
// kernel: context_forward.2
= control target key start
LH: loop header
LB: loop body
LE: loop exit
PB: predicated region body
PF: predicated region fallthrough
CT: control target
= control target key end

     0   :  { %11 = vsyncpa [#allocation5], 0  ;;  %s465_s0 = inlined_call_operand.vmem [shape: s32[1,8], index: 0, kind: input, shape index: {}]   ;;  %s466_s1 = inlined_call_operand.hbm [shape: f32[8,32], index: 1, kind: input, shape index: {}]   ;;  %s467_s2 = inlined_call_operand.hbm [shape: bf16[32,32], index: 2, kind: input, shape index: {}]   ;;  %s468_s3 = inlined_call_operand.hbm [shape: f32[1,32], index: 3, kind: input, shape index: {}]   ;;  %s469_s4 = inlined_call_operand.hbm [shape: bf16[32,32], index: 4, kind: input, shape index: {}]   ;;  %s470_s5 = inlined_call_operand.vmem [shape: f32[1,32], index: 5, kind: input, shape index: {}]   ;;  %s471_s6 = inlined_call_operand.vmem [shape: f32[2,32], index: 6, kind: output, shape index: {}]  }
   0x1   :  { %12 = vsyncpa [#allocation7], 0  ;;  %s31_s23 = sshll.u32 %s467_s2, 4  ;;  %s32_s23 = int_to_ptr.hbm [resolvable:$true] %s31_s23 }
   0x2   :  { %13 = vsyncpa [#allocation10], 0  ;;  %s396_s24 = smov [#allocation6]   ;;  %s21_s28 = sshll.u32 %s466_s1, 4  ;;  %s22_s28 = int_to_ptr.hbm [resolvable:$true] %s21_s28 }
   0x3   :  { %s33_s25 = sshll.u32 %s396_s24, 4  ;;  %s397_s29 = smov 64   ;;  %s34_s25 = int_to_ptr.vmem [resolvable:$true] %s33_s25 }
   0x4   :  { %s398_s30 = smov 4   ;;  %s399_s7 = smov [#allocation4]  }
   0x5   :  { %39 = dma.hbm_to_vmem [thread:$0]  %s32_s23, 256, %s34_s25, [#allocation7], %s397_s29, %s397_s29, %s398_s30  }
   0x6   :  { %s23_s8 = sshll.u32 %s399_s7, 4  ;;  %s45_s11 = sshll.u32 %s468_s3, 4  ;;  %s24_s8 = int_to_ptr.vmem [resolvable:$true] %s23_s8  ;;  %s46_s11 = int_to_ptr.hbm [resolvable:$true] %s45_s11 }
   0x7   :  { %26 = dma.hbm_to_vmem [thread:$0]  %s22_s28, 128, %s24_s8, [#allocation5]  }
   0x8   :  { %s55_s13 = sshll.u32 %s469_s4, 4  ;;  %s400_s14 = smov [#allocation8]   ;;  %s56_s13 = int_to_ptr.hbm [resolvable:$true] %s55_s13 }
   0x9   :  { %s47_s15 = sshll.u32 %s400_s14, 4  ;;  %s401_s1 = smov [#allocation9]   ;;  %s48_s15 = int_to_ptr.vmem [resolvable:$true] %s47_s15 }
   0xa   :  { %50 = dma.hbm_to_vmem [thread:$0]  %s46_s11, 16, %s48_s15, [#allocation7]  }
   0xb   :  { %s57_s16 = sshll.u32 %s401_s1, 4  ;;  %s58_s16 = int_to_ptr.vmem [resolvable:$true] %s57_s16 }
   0xc   :  { %63 = dma.hbm_to_vmem [thread:$0]  %s56_s13, 256, %s58_s16, [#allocation10], %s397_s29, %s397_s29, %s398_s30  }
   0xd   :  { %390 = dma.done.wait [#allocation5], 128  }
   0xe   :  { %391 = vsyncadd [#allocation5], 4294967168 }
   0xf   :  { %392 = dma.done.wait [#allocation7], 272  }
  0x10   :  { %393 = vsyncadd [#allocation7], 4294967024 }
  0x11   :  { %394 = dma.done.wait [#allocation10], 256  }
  0x12   :  { %395 = vsyncadd [#allocation10], 4294967040  ;;  %vm87_vm0 = vcmask 254976   ;;  %vm89_vm1 = vcmask 1024   ;;  %v92_v0 = vlaneseq  ;;  %v402_v1 = vmov 0.0   ;;  %v99_v4 = vld [vmem:[#allocation4] sm:$0xff] }
  0x13   :  { %88 = vst.msk [vmem:[#allocation2] sm:$0x3] %vm87_vm0, %v402_v1  ;;  %v285_v3 = vld [vmem:[%s465_s0] ss:$0 sm:$0xff]  ;;  %vm128_vm2 = vcmask 58368   ;;  %119 = vmatpush.msra.mxu0 %v99_v4  ;;  %vm100_vm3 = vcmask 64512  }
  0x14   :  { %90 = vst.msk [vmem:[#allocation3] sm:$0x3] %vm89_vm1, %v402_v1  ;;  %v93_v2 = vshrl.u32 %v92_v0, 7  ;;  %v403_v7 = vmov 0   ;;  %v273_v8 = vld [vmem:[#allocation6 + $0x8] sm:$0xff]  ;;  %v272_v18 = vld [vmem:[#allocation6] sm:$0xff] }
  0x15   :  { %284 = vset.pattern.permute.xlu0 %v403_v7  ;;  %179 = vmatpush.bf16.msra.mxu1 %v273_v8  ;;  %vm169_vm5 = vcmask 261120   ;;  %v275_v23 = vld [vmem:[#allocation9 + $0x8] sm:$0xff]  ;;  %v274_v24 = vld [vmem:[#allocation9] sm:$0xff]  ;;  %v286_v25 = vld [vmem:[#allocation8] ss:$0 sm:$0xff] }
  0x16   :  { %vm95_vm4 = vcmp.eq.s32.totalorder %v93_v2, %v285_v3  ;;  %217 = vmatpush.bf16.msra.mxu2 %v275_v23  ;;  %v287_v31 = vld [vmem:[%s470_s5] ss:$0 sm:$0xff] }
  0x17   :  { %v251_v5 = vsel %vm95_vm4, 1.0, %v402_v1 }
  0x18   :  { %v129_v6 = vsel %vm128_vm2, %v251_v5, 0.0  ;;  %252 = vmatmul.msk.f32.vlgmr.msra.gmra.mxu0 %vm100_vm3, %v251_v5 }
  0x19   :  { %130 = vadd.xlane.f32.xlu0 %v129_v6  ;;  %180 = vmatpush.bf16.msra.mxu1 %v272_v18 }
  0x1a   :  { %v98_v12 = vld [vmem:[#allocation2] sm:$0x3]  ;;  %218 = vmatpush.bf16.msra.mxu2 %v274_v24 }
  0x1b   :  { %v127_v9 = vld [vmem:[#allocation3] sm:$0x3] }
  0x8c   :  { %v131_v10 = vpop.xlane.xlu0 %130 }
  0x8d   :  { %v132_v11 = vadd.f32 %v131_v10, %v127_v9 }
  0x8f   :  { %134 = vst.msk [vmem:[#allocation3] sm:$0x3] %vm89_vm1, %v132_v11 }
  0x95   :  { %v121_v13 = vpop.f32.mrf.mxu0 }
  0x96   :  { %v138_v14 = vld [vmem:[#allocation3] sm:$0x3]  ;;  %v124_v15 = vadd.f32 %v121_v13, %v98_v12 }
  0x97   :  { %v139_v16 = vmax.f32 %v138_v14, 1.0 }
  0x98   :  { %126 = vst.msk [vmem:[#allocation2] sm:$0x3] %vm87_vm0, %v124_v15 }
  0x99   :  { %288 = vrcp.f32 %v139_v16 }
  0x9f   :  { %v289_v17 = vpop.eup %288  ;;  %v141_v19 = vld [vmem:[#allocation2] sm:$0x3] }
  0xa0   :  { %144 = vperm.xlu0 %284, %v289_v17  }
 0x112   :  { %v145_v20 = vpop.permute.xlu0 %144 }
 0x113   :  { %v147_v21 = vmul.f32 %v145_v20, %v141_v19 }
 0x115   :  { %v148_v22 = vpack.c.bf16 %v147_v21, %v147_v21 }
 0x117   :  { %261 = vmatmul.msk.bf16.vlgmr.msra.gmra.mxu1 %vm169_vm5, %v148_v22 }
 0x194   :  { %v182_v26 = vpop.f32.mrf.mxu1 }
 0x195   :  { %v183_v27 = vadd.f32 %v286_v25, %v182_v26 }
 0x197   :  { %v186_v28 = vmax.f32 %v183_v27, 0.0 }
 0x199   :  { %v187_v29 = vpack.c.bf16 %v186_v28, %v186_v28 }
 0x19b   :  { %270 = vmatmul.msk.bf16.vlgmr.msra.gmra.mxu2 %vm169_vm5, %v187_v29 }
 0x19c   :  { %v184_v30 = vpop.f32.mrf.mxu1 }
 0x21e   :  { %v220_v32 = vpop.f32.mrf.mxu2 }
 0x21f   :  { %v221_v33 = vadd.f32 %v287_v31, %v220_v32 }
 0x221   :  { %v271_v34 = vmul.f32 -1.442695, %v221_v33 }
 0x223   :  { %290 = vpow2.f32 %v271_v34 }
 0x226   :  { %v222_v35 = vpop.f32.mrf.mxu2 }
 0x229   :  { %v291_v36 = vpop.eup %290 }
 0x22a   :  { %v227_v37 = vadd.f32 1.0, %v291_v36 }
 0x22c   :  { %292 = vrcp.f32 %v227_v37  ;;  %v239_v41 = vand.u32 2147483648, %v227_v37  ;;  %v237_v43 = vand.u32 2147483647, %v227_v37  ;;  %vm233_vm7 = vweird.f32 %v227_v37 }
 0x22e   :  { %v240_v45 = vor.u32 1.1754944e-38, %v239_v41  ;;  %vm238_vm9 = vcmp.eq.f32.partialorder %v237_v43, 8.507059e+37 }
 0x232   :  { %v293_v38 = vpop.eup %292 }
 0x233   :  { %v229_v39 = vmul.f32 %v293_v38, %v227_v37  ;;  %vm234_vm6 = vweird.f32 %v293_v38 }
 0x234   :  { %vm235_vm8 = vmor %vm233_vm7, %vm234_vm6 }
 0x235   :  { %v230_v40 = vsub.f32 1.0, %v229_v39 }
 0x237   :  { %v231_v42 = vmul.f32 %v293_v38, %v230_v40 }
 0x239   :  { %v232_v44 = vadd.f32 %v293_v38, %v231_v42 }
 0x23b   :  { %v236_v46 = vsel %vm235_vm8, %v293_v38, %v232_v44 }
 0x23c   :  { %v241_v47 = vsel %vm238_vm9, %v240_v45, %v236_v46 }
 0x23d   :  { %243 = vst.msk [vmem:[%s471_s6] sm:$0x3] %vm87_vm0, %v241_v47 }
 0x23e   :  { %248 = vsyncpa [#allocation5], 1 }
 0x23f   :  { %249 = vsyncpa [#allocation7], 1 }
 0x240   :  { %250 = vsyncpa [#allocation10], 1 }

// kernel: context_forward.3
= control target key start
LH: loop header
LB: loop body
LE: loop exit
PB: predicated region body
PF: predicated region fallthrough
CT: control target
= control target key end

     0   :  { %s141_s0 = inlined_call_operand.vmem [shape: s32[8,1], index: 0, kind: input, shape index: {}]   ;;  %s142_s1 = inlined_call_operand.vmem [shape: f32[8,32], index: 1, kind: input, shape index: {}]   ;;  %s143_s2 = inlined_call_operand.vmem [shape: f32[2,32], index: 2, kind: input, shape index: {}]   ;;  %s144_s3 = inlined_call_operand.hbm [shape: f32[8,32], index: 3, kind: output, shape index: {}]  }
   0x1   :  { %v17_v0 = vld [vmem:[%s141_s0] sm:$0xff] }
   0x2   :  { %8 = vsyncpa [#allocation3], 0  ;;  %v106_v1 = vmov 0   ;;  %v24_v2 = vld [vmem:[%s143_s2] sm:$0x3]  ;;  %vm29_vm0 = vcmask 1041408   ;;  %v15_v3 = vlaneseq }
   0x3   :  { %79 = vset.pattern.permute.xlu0 %v106_v1  ;;  %74 = vmatpush.msk.msra.mxu0 %vm29_vm0, %v24_v2  ;;  %vm25_vm1 = vcmask 15360   ;;  %v107_v6 = vmov 0.0   ;;  %v53_v8 = vld [vmem:[%s142_s1] sm:$0xff]  ;;  %s108_s17 = smov [#allocation2]   ;;  %s64_s2 = sshll.u32 %s144_s3, 4  ;;  %vm55_vm3 = vcmask 261120   ;;  %s65_s2 = int_to_ptr.hbm [resolvable:$true] %s64_s2 }
   0x4   :  { %19 = vperm.xlu0 %79, %v17_v0   ;;  %v16_v4 = vand.u32 127, %v15_v3  ;;  %s62_s18 = sshll.u32 %s108_s17, 4  ;;  %s63_s18 = int_to_ptr.vmem [resolvable:$true] %s62_s18 }
  0x76   :  { %v20_v5 = vpop.permute.xlu0 %19 }
  0x77   :  { %vm21_vm2 = vcmp.eq.s32.totalorder %v16_v4, %v20_v5 }
  0x78   :  { %v73_v7 = vsel %vm21_vm2, 1.0, %v107_v6 }
  0x79   :  { %75 = vmatmul.msk.f32.vlgmr.msra.gmra.mxu0 %vm25_vm1, %v73_v7 }
  0xf6   :  { %v50_v9 = vpop.f32.mrf.mxu0 }
  0xf7   :  { %v54_v10 = vmul.f32 %v53_v8, %v50_v9 }
  0xf9   :  { %56 = vst.msk [vmem:[#allocation2] sm:$0xff] %vm55_vm3, %v54_v10 }
  0xfa   :  { %67 = dma.vmem_to_hbm [thread:$0]  %s63_s18, 128, %s65_s2, [#allocation3]  }
  0xfb   :  { %104 = dma.done.wait [#allocation3], 128  }
  0xfc   :  { %105 = vsyncadd [#allocation3], 4294967168 }
  0xfd   :  { %72 = vsyncpa [#allocation3], 1 }

</bundles_post_ra>
